<compile_context>
chip_gen: v6e
topology: v6e:2x2x1
jax: 0.10.0
libtpu: 0.0.40
codegen_flags: <defaults>
</compile_context>

<pallas_src>
import math

import jax
import jax.numpy as jnp
from jax.experimental import pallas as pl
from jax.experimental.pallas import tpu as pltpu


def _round_up(x, m):
    return ((x + m - 1) // m) * m


def _cdiv(a, b):
    return -(-a // b)


def _default_vmem_limit_bytes():
    """Generation-aware VMEM request: ~75% of physical, capped at 100 MiB.

    v5e / v6e (128 MiB parts) -> 96 MiB ; v7x (64 MiB per TC) -> 48 MiB.
    """
    try:
        cap = pltpu.get_tpu_info().vmem_capacity_bytes
    except Exception:
        cap = 64 * 1024 * 1024                     # conservative fallback
    return min(int(cap * 3 // 4), 100 * 1024 * 1024)


# ---------------------------------------------------------------------------
# Kernels
# ---------------------------------------------------------------------------
def _lin_resident_kernel(x_ref, w_ref, b_ref, o_ref):
    # x: (tm, K); w: (K, Np) VMEM-resident; b: (1, Np); o: (tm, Np).
    # Single K block -> no accumulator scratch, no init/finalize branches.
    acc = jnp.dot(x_ref[...], w_ref[...], preferred_element_type=jnp.float32)
    o_ref[...] = (acc + b_ref[...].astype(jnp.float32)).astype(o_ref.dtype)


def _lin_tiled_kernel(x_ref, w_ref, b_ref, o_ref, acc_ref):
    # x: (tm, tk); w: (tk, tn); b: (1, tn); o: (tm, tn); acc: f32 (tm, tn).
    k = pl.program_id(2)
    prod = jnp.dot(x_ref[...], w_ref[...], preferred_element_type=jnp.float32)

    @pl.when(k == 0)
    def _():                                  # bias-seeded first partial
        acc_ref[...] = prod + b_ref[...].astype(jnp.float32)

    @pl.when(k > 0)
    def _():
        acc_ref[...] += prod

    @pl.when(k == pl.num_programs(2) - 1)
    def _():
        o_ref[...] = acc_ref[...].astype(o_ref.dtype)


# ---------------------------------------------------------------------------
# Wrapper
# ---------------------------------------------------------------------------
def lin_forward(x, weight, bias, *, tm=512, tn=256, tk=1024,
                vmem_limit_bytes=None, force_tiled=False, compute_dtype=None):
    """Pallas LIN.forward: y = x @ W^T + b (nn.Linear semantics).

    x:      [..., K]
    weight: [N, K]   (PyTorch (out_features, in_features) layout)
    bias:   [N]
    """
    n_out, k_in = weight.shape
    lead = x.shape[:-1]
    m = math.prod(lead) if lead else 1
    out_dtype = x.dtype
    if vmem_limit_bytes is None:
        vmem_limit_bytes = _default_vmem_limit_bytes()

    x2d = x.reshape(m, k_in)
    # One-time wrapper transpose to (K, N): the kernel then runs a plain
    # (M,K)x(K,N) matmul with no repeated in-kernel weight transpose.
    wt = weight.T
    b2d = bias.reshape(1, n_out)
    if compute_dtype is not None:              # e.g. jnp.bfloat16 on v6e/v7x
        x2d = x2d.astype(compute_dtype)
        wt = wt.astype(compute_dtype)

    x_item = x2d.dtype.itemsize
    w_item = wt.dtype.itemsize
    b_item = b2d.dtype.itemsize
    o_item = jnp.dtype(out_dtype).itemsize

    # Sublane packing of the compute dtype (f32: 8, bf16: 16, int8/fp8: 32).
    sub_align = {4: 8, 2: 16, 1: 32}.get(x_item, 8)

    # ---- M (row) tiling: never pad the activation in M, use a cdiv grid ----
    tm = _round_up(tm, sub_align)
    tm_eff = min(_round_up(m, sub_align), tm)
    # Megacore: keep >= 2 row blocks for medium/large M so both TCs get work.
    if m > 256 and _cdiv(m, tm_eff) < 2:
        tm_eff = _round_up(_cdiv(m, 2), sub_align)

    n_pad128 = _round_up(n_out, 128)
    budget = int(0.7 * vmem_limit_bytes)

    def resident_footprint(tm_, k_, n_):
        return (2 * tm_ * k_ * x_item          # x tile (double-buffered)
                + k_ * n_ * w_item             # resident weight, Buffered(1)
                + n_ * b_item                  # bias, Buffered(1)
                + 2 * tm_ * n_ * o_item)       # out tile (double-buffered)

    def tiled_footprint(tm_, tn_, tk_):
        return (2 * tm_ * tk_ * x_item
                + 2 * tk_ * tn_ * w_item
                + 2 * tn_ * b_item
                + 2 * tm_ * tn_ * o_item
                + tm_ * tn_ * 4)               # f32 accumulator scratch

    use_resident = ((not force_tiled)
                    and resident_footprint(tm_eff, k_in, n_pad128) <= budget)

    if use_resident:
        # -------- resident-weight fast path: grid = (M tiles,), K,N whole ---
        n_pad = n_pad128
        if n_pad != n_out:
            wt = jnp.pad(wt, ((0, 0), (0, n_pad - n_out)))
            b2d = jnp.pad(b2d, ((0, 0), (0, n_pad - n_out)))
        grid_m = _cdiv(m, tm_eff)
        out_padded = pl.pallas_call(
            _lin_resident_kernel,
            out_shape=jax.ShapeDtypeStruct((m, n_pad), out_dtype),
            grid_spec=pltpu.PrefetchScalarGridSpec(
                num_scalar_prefetch=0,
                grid=(grid_m,),
                in_specs=[
                    pl.BlockSpec((tm_eff, k_in), lambda i: (i, 0)),
                    pl.BlockSpec((k_in, n_pad), lambda i: (0, 0),
                                 pipeline_mode=pl.Buffered(1)),
                    pl.BlockSpec((1, n_pad), lambda i: (0, 0),
                                 pipeline_mode=pl.Buffered(1)),
                ],
                out_specs=pl.BlockSpec((tm_eff, n_pad), lambda i: (i, 0)),
            ),
            compiler_params=pltpu.CompilerParams(
                dimension_semantics=("parallel",),
                vmem_limit_bytes=vmem_limit_bytes,
            ),
        )(x2d, wt, b2d)
    else:
        # -------- tiled (M, N, K) path with f32 accumulator ------------------
        tn = _round_up(tn, 128)
        tk = _round_up(tk, 128)
        if n_pad128 <= tn:
            n_pad, tn_eff = n_pad128, n_pad128
        else:
            n_pad, tn_eff = _round_up(n_out, tn), tn

        def choose_k(tk_):
            if k_in <= tk_:
                return k_in, k_in              # single K block, no x padding
            return _round_up(k_in, tk_), tk_

        k_pad, tk_eff = choose_k(tk)
        # Budget-driven shrink: K tile first, then M tile.
        while tiled_footprint(tm_eff, tn_eff, tk_eff) > budget and tk_eff > 128:
            tk = max(128, tk // 2)
            k_pad, tk_eff = choose_k(tk)
        while (tiled_footprint(tm_eff, tn_eff, tk_eff) > budget
               and tm_eff > sub_align):
            tm_eff = max(sub_align, _round_up(tm_eff // 2, sub_align))

        # Zero-pad K (reduction correctness) and N (lane-dense output).
        if k_pad != k_in:
            x2d = jnp.pad(x2d, ((0, 0), (0, k_pad - k_in)))
        if (k_pad, n_pad) != wt.shape:
            wt = jnp.pad(wt, ((0, k_pad - k_in), (0, n_pad - n_out)))
        if n_pad != n_out:
            b2d = jnp.pad(b2d, ((0, 0), (0, n_pad - n_out)))

        grid = (_cdiv(m, tm_eff), n_pad // tn_eff, k_pad // tk_eff)
        out_padded = pl.pallas_call(
            _lin_tiled_kernel,
            out_shape=jax.ShapeDtypeStruct((m, n_pad), out_dtype),
            grid_spec=pltpu.PrefetchScalarGridSpec(
                num_scalar_prefetch=0,
                grid=grid,
                in_specs=[
                    pl.BlockSpec((tm_eff, tk_eff), lambda i, j, k: (i, k)),
                    pl.BlockSpec((tk_eff, tn_eff), lambda i, j, k: (k, j)),
                    pl.BlockSpec((1, tn_eff), lambda i, j, k: (0, j)),
                ],
                out_specs=pl.BlockSpec((tm_eff, tn_eff), lambda i, j, k: (i, j)),
                scratch_shapes=[pltpu.VMEM((tm_eff, tn_eff), jnp.float32)],
            ),
            compiler_params=pltpu.CompilerParams(
                dimension_semantics=("parallel", "parallel", "arbitrary"),
                vmem_limit_bytes=vmem_limit_bytes,
            ),
        )(x2d, wt, b2d)

    out = out_padded if out_padded.shape[1] == n_out else out_padded[:, :n_out]
    return out.reshape(*lead, n_out)


if __name__ == "__main__":
    key = jax.random.PRNGKey(0)
    k_x, k_b, k_x2, k_w2, k_b2 = jax.random.split(key, 5)

    # --- Test 1: LIN module config (inp_dim=32), weight = identity ----------
    B, S, D = 2, 8, 32
    x = jax.random.normal(k_x, (B, S, D), dtype=jnp.float32)
    weight = jnp.eye(D, dtype=jnp.float32)            # LIN.__init__ copies eye
    bound = 1.0 / math.sqrt(D)                        # default nn.Linear bias init
    bias = jax.random.uniform(k_b, (D,), jnp.float32, minval=-bound, maxval=bound)

    out = jax.block_until_ready(lin_forward(x, weight, bias))
    ref = x @ weight.T + bias
    assert out.shape == x.shape
    assert jnp.allclose(out, ref, atol=1e-5), "mismatch vs reference (resident path)"

    # --- Test 2: exercise the tiled N/K-reduction path with ragged dims -----
    M2, D2 = 300, 200
    x2 = jax.random.normal(k_x2, (M2, D2), dtype=jnp.float32)
    w2 = jax.random.normal(k_w2, (D2, D2), dtype=jnp.float32) * 0.05
    b2 = jax.random.normal(k_b2, (D2,), dtype=jnp.float32)
    out2 = jax.block_until_ready(
        lin_forward(x2, w2, b2, tm=128, tn=128, tk=128, force_tiled=True))
    ref2 = x2 @ w2.T + b2
    assert out2.shape == ref2.shape
    assert jnp.allclose(out2, ref2, atol=2e-3, rtol=1e-5), \
        "mismatch vs reference (tiled path)"

    print("KERNEL_OK")
</pallas_src>

<mosaic_0001>
module attributes {stable_mosaic.version = 11 : i64} {
  func.func @_lin_resident_kernel(%arg0: i32, %arg1: memref<16x32xf32, #tpu.memory_space<vmem>>, %arg2: memref<32x128xf32, #tpu.memory_space<vmem>>, %arg3: memref<1x128xf32, #tpu.memory_space<vmem>>, %arg4: memref<16x128xf32, #tpu.memory_space<vmem>>) attributes {dimension_semantics = [#tpu.dimension_semantics<parallel>], iteration_bounds = array<i64: 1>, scalar_prefetch = 0 : i64, scratch_operands = 0 : i64, tpu.core_type = #tpu.core_type<tc>, window_params = [{transform_indices = @transform_0, window_bounds = array<i64: 16, 32>}, {pipeline_mode = #tpu.pipeline_mode<synchronous>, transform_indices = @transform_1, window_bounds = array<i64: 32, 128>}, {pipeline_mode = #tpu.pipeline_mode<synchronous>, transform_indices = @transform_2, window_bounds = array<i64: 1, 128>}, {transform_indices = @transform_3, window_bounds = array<i64: 16, 128>}]} {
    %c0 = arith.constant 0 : index
    %c0_0 = arith.constant 0 : index
    %0 = vector.load %arg1[%c0, %c0_0] : memref<16x32xf32, #tpu.memory_space<vmem>>, vector<16x32xf32>
    %c0_1 = arith.constant 0 : index
    %c0_2 = arith.constant 0 : index
    %1 = vector.load %arg2[%c0_1, %c0_2] : memref<32x128xf32, #tpu.memory_space<vmem>>, vector<32x128xf32>
    %cst = arith.constant dense<0.000000e+00> : vector<16x128xf32>
    %2 = tpu.matmul %0, %1, %cst {dimension_numbers = #tpu.dot_dimension_numbers<[1], [0], [0], [1], [0, 0, 1, 1], [], []>} : vector<16x32xf32>, vector<32x128xf32>, vector<16x128xf32> -> vector<16x128xf32>
    %c0_3 = arith.constant 0 : index
    %c0_4 = arith.constant 0 : index
    %3 = vector.load %arg3[%c0_3, %c0_4] : memref<1x128xf32, #tpu.memory_space<vmem>>, vector<1x128xf32>
    %4 = vector.broadcast %3 : vector<1x128xf32> to vector<16x128xf32>
    %5 = arith.addf %2, %4 : vector<16x128xf32>
    %c0_5 = arith.constant 0 : index
    %c0_6 = arith.constant 0 : index
    %6 = vector.load %arg4[%c0_5, %c0_6] : memref<16x128xf32, #tpu.memory_space<vmem>>, vector<16x128xf32>
    tpu.vector_store %arg4[%c0_5, %c0_6], %5 {strides = array<i32>} : memref<16x128xf32, #tpu.memory_space<vmem>>, vector<16x128xf32>,
    return
  }
  func.func @transform_0(%arg0: i32) -> (i32, i32) {
    %c0_i32 = arith.constant 0 : i32
    %c0_i32_0 = arith.constant 0 : i32
    return %arg0, %c0_i32 : i32, i32
  }
  func.func @transform_1(%arg0: i32) -> (i32, i32) {
    %c0_i32 = arith.constant 0 : i32
    %c0_i32_0 = arith.constant 0 : i32
    %c0_i32_1 = arith.constant 0 : i32
    return %c0_i32, %c0_i32_0 : i32, i32
  }
  func.func @transform_2(%arg0: i32) -> (i32, i32) {
    %c0_i32 = arith.constant 0 : i32
    %c0_i32_0 = arith.constant 0 : i32
    %c0_i32_1 = arith.constant 0 : i32
    return %c0_i32, %c0_i32_0 : i32, i32
  }
  func.func @transform_3(%arg0: i32) -> (i32, i32) {
    %c0_i32 = arith.constant 0 : i32
    %c0_i32_0 = arith.constant 0 : i32
    return %arg0, %c0_i32 : i32, i32
  }
}

</mosaic_0001>

<bundles_post_ra>
// kernel: tpu_custom_call.1
= control target key start
LH: loop header
LB: loop body
LE: loop exit
PB: predicated region body
PF: predicated region fallthrough
CT: control target
= control target key end

     0   :  { %8 = vsyncpa [#allocation3], 0  ;;  %s297_s0 = inlined_call_operand.hbm [shape: f32[16,32], index: 0, kind: input, shape index: {}]   ;;  %s298_s1 = inlined_call_operand.hbm [shape: f32[32,128], index: 1, kind: input, shape index: {}]   ;;  %s299_s2 = inlined_call_operand.vmem [shape: f32[1,128], index: 2, kind: input, shape index: {}]   ;;  %s300_s3 = inlined_call_operand.hbm [shape: f32[16,128], index: 3, kind: output, shape index: {}]  }
   0x1   :  { %9 = vsyncpa [#allocation6], 0 }
   0x2   :  { %10 = vsyncpa [#allocation4], 0  ;;  %s249_s12 = smov [#allocation2]  }
   0x3   :  { %s16_s13 = sshll.u32 %s249_s12, 4  ;;  %s17_s13 = int_to_ptr.vmem [resolvable:$true] %s16_s13 }
   0x4   :  { %s191_s14 = scalar_lea.vmem %s17_s13, 256  ;;  %p196_p1 = scmp.lt.s32.totalorder %s17_s13, %s17_s13 }
   0x5   :  { %p192_p0 = scmp.ne.s32.totalorder %s17_s13, %s191_s14  ;;  %p197_p2 = scmp.lt.s32.totalorder %s191_s14, %s191_s14 }
   0x7   :  { %p198_p3 = por %p197_p2, %p196_p1 }
   0x9   :  { %p199_p4 = pnand %p198_p3, %p192_p0 }
   0xb   :  { %202 = shalt.err (!%p199_p4)
}
   0xc   :  { %s250_s15 = smov 128   ;;  %s251_s16 = smov 8  }
   0xd   :  { %22 = dma.hbm_to_vmem [thread:$0]  %s297_s0, 256, %s17_s13, [#allocation3], %s250_s15, %s250_s15, %s251_s16  }
   0xe   :  { %s252_s19 = smov [#allocation5]  }
   0xf   :  { %s28_s20 = sshll.u32 %s252_s19, 4  ;;  %s29_s20 = int_to_ptr.vmem [resolvable:$true] %s28_s20 }
  0x10   :  { %s211_s21 = scalar_lea.vmem %s29_s20, 512  ;;  %p216_p6 = scmp.lt.s32.totalorder %s29_s20, %s29_s20 }
  0x11   :  { %p212_p5 = scmp.ne.s32.totalorder %s29_s20, %s211_s21  ;;  %p217_p7 = scmp.lt.s32.totalorder %s211_s21, %s211_s21 }
  0x13   :  { %p218_p8 = por %p217_p7, %p216_p6 }
  0x15   :  { %p219_p9 = pnand %p218_p8, %p212_p5 }
  0x17   :  { %222 = shalt.err (!%p219_p9)
}
  0x18   :  { %34 = dma.hbm_to_vmem [thread:$0]  %s298_s1, 512, %s29_s20, [#allocation6], %s250_s15, %s250_s15, %s251_s16  }
  0x19   :  { %243 = dma.done.wait [#allocation3], 256  }
  0x1a   :  { %244 = vsyncadd [#allocation3], 4294967040 }
  0x1b   :  { %245 = dma.done.wait [#allocation6], 512  }
  0x1c   :  { %246 = vsyncadd [#allocation6], 4294966784  ;;  %vm56_vm0 = vcmask 261120   ;;  %v48_v0 = vld [vmem:[#allocation5 + $0x18] sm:$0xff]  ;;  %v47_v1 = vld [vmem:[#allocation5 + $0x10] sm:$0xff]  ;;  %s253_s24 = smov [#allocation7]  }
  0x1d   :  { %167 = vmatprep.subr.mxu0 %v48_v0  ;;  %v43_v2 = vld [vmem:[#allocation2] sm:$0xff]  ;;  %v46_v3 = vld [vmem:[#allocation5 + $0x8] sm:$0xff]  ;;  %v45_v4 = vld [vmem:[#allocation5] sm:$0xff]  ;;  %s145_s25 = sshll.u32 %s253_s24, 4  ;;  %s146_s25 = int_to_ptr.vmem [resolvable:$true] %s145_s25 }
  0x1e   :  { %168 = vmatpush3.msra.mxu0 %v48_v0  ;;  %175 = vmatprep.mubr.msk.f32.mxu0 %vm56_vm0, %v43_v2  ;;  %v44_v5 = vld [vmem:[#allocation2 + $0x8] sm:$0xff]  ;;  %v158_v6 = vld [vmem:[%s299_s2] ss:$0 sm:$0xff]  ;;  %s223_s26 = scalar_lea.vmem %s146_s25, 256  ;;  %p228_p11 = scmp.lt.s32.totalorder %s146_s25, %s146_s25 }
  0x1f   :  { %169 = vmatprep.subr.mxu0 %v47_v1  ;;  %p224_p10 = scmp.ne.s32.totalorder %s146_s25, %s223_s26  ;;  %p229_p12 = scmp.lt.s32.totalorder %s223_s26, %s223_s26 }
  0x20   :  { %170 = vmatpush3.msra.mxu0 %v47_v1 }
  0x21   :  { %171 = vmatprep.subr.mxu0 %v46_v3  ;;  %p230_p13 = por %p229_p12, %p228_p11 }
  0x22   :  { %172 = vmatpush3.msra.mxu0 %v46_v3 }
  0x23   :  { %173 = vmatprep.subr.mxu0 %v45_v4  ;;  %p231_p0 = pnand %p230_p13, %p224_p10 }
  0x24   :  { %174 = vmatpush3.msra.mxu0 %v45_v4 }
  0x25   :  { %176 = vmatmul.mubr.msk.f32.vlgmr.msra.gmra.mxu0 %vm56_vm0, %v44_v5 }
  0xe5   :  { %v177_v7 = vpop.f32.mrf.mxu0 }
  0xe6   :  { %v135_v8 = vadd.f32 %v177_v7, %v158_v6 }
  0xe7   :  { %v129_v9 = vpop.f32.mrf.mxu0 }
  0xe8   :  { %139 = vst [vmem:[#allocation7 + $0x8] sm:$0xff] %v135_v8  ;;  %v130_v10 = vadd.f32 %v158_v6, %v129_v9 }
  0xea   :  { %138 = vst [vmem:[#allocation7] sm:$0xff] %v130_v10 }
  0xeb   :  { %234 = shalt.err (!%p231_p0)
}
  0xec   :  { %151 = dma.vmem_to_hbm [thread:$0]  %s146_s25, 256, %s300_s3, [#allocation4], %s250_s15, %s250_s15, %s251_s16  }
  0xed   :  { %247 = dma.done.wait [#allocation4], 256  }
  0xee   :  { %248 = vsyncadd [#allocation4], 4294967040 }
  0xef   :  { %155 = vsyncpa [#allocation3], 1 }
  0xf0   :  { %156 = vsyncpa [#allocation6], 1 }
  0xf1   :  { %157 = vsyncpa [#allocation4], 1 }

</bundles_post_ra>
